<compile_context>
chip_gen: v7x
topology: tpu7x:2x2x1
jax: 0.10.0
libtpu: 0.0.40
codegen_flags: <defaults>
</compile_context>

<pallas_src>
import jax
import jax.numpy as jnp
from jax.experimental import pallas as pl
from jax.experimental.pallas import tpu as pltpu


def evalnet_kernel(x_ref, w1_ref, b1_ref, w2_ref, b2_ref, w3_ref, b3_ref, o_ref):
    # x_ref: (in_pad, TB) bf16, batch on lanes.
    x = x_ref[...]

    # Layer 1: (64, in_pad) @ (in_pad, TB) -> (64, TB), f32 accumulation.
    h1 = jnp.dot(w1_ref[...], x, preferred_element_type=jnp.float32) + b1_ref[...]
    h1 = jnp.maximum(h1, 0.0)

    # Layer 2: (64, 64) @ (64, TB) -> (64, TB).
    h2 = jnp.dot(w2_ref[...], h1.astype(w2_ref.dtype),
                 preferred_element_type=jnp.float32) + b2_ref[...]
    h2 = jnp.maximum(h2, 0.0)

    # Layer 3 (64 -> 1): VPU multiply + sublane reduction instead of a 1-wide
    # MXU matmul; b3 is a scalar living in SMEM.
    y = jnp.sum(h2 * w3_ref[...], axis=0, keepdims=True) + b3_ref[0]
    o_ref[...] = y.astype(o_ref.dtype)


def _round_up(n, m):
    return ((n + m - 1) // m) * m


def evalnet_forward(x, params, *, max_batch_tile=512):
    """x: (B, in_size) float32. params in PyTorch layout:
       w1 (64,in), b1 (64,), w2 (64,64), b2 (64,), w3 (1,64), b3 (1,)."""
    B, in_size = x.shape
    assert params["w1"].shape[1] == in_size

    in_pad = _round_up(in_size, 8)                 # pad contraction dim
    tb = min(max_batch_tile, _round_up(B, 128))    # lane-dense batch tile
    b_pad = _round_up(B, tb)
    grid = (b_pad // tb,)

    # Transpose to batch-on-lanes, zero-pad, bf16 for the MXU operands.
    x_t = jnp.pad(x, ((0, b_pad - B), (0, in_pad - in_size))).T.astype(jnp.bfloat16)
    w1 = jnp.pad(params["w1"], ((0, 0), (0, in_pad - in_size))).astype(jnp.bfloat16)
    w2 = params["w2"].astype(jnp.bfloat16)
    w3 = params["w3"].reshape(64, 1).astype(jnp.float32)   # column for VPU path
    b1 = params["b1"].reshape(64, 1).astype(jnp.float32)
    b2 = params["b2"].reshape(64, 1).astype(jnp.float32)
    b3 = params["b3"].reshape(1).astype(jnp.float32)

    def resident(a):  # full block, same block every grid step -> VMEM-resident
        return pl.BlockSpec(a.shape, lambda i: (0,) * a.ndim,
                            memory_space=pltpu.VMEM)

    out = pl.pallas_call(
        evalnet_kernel,
        out_shape=jax.ShapeDtypeStruct((1, b_pad), jnp.float32),
        grid=grid,
        in_specs=[
            pl.BlockSpec((in_pad, tb), lambda i: (0, i), memory_space=pltpu.VMEM),
            resident(w1), resident(b1), resident(w2), resident(b2), resident(w3),
            pl.BlockSpec(memory_space=pltpu.MemorySpace.SMEM),   # b3 scalar
        ],
        out_specs=pl.BlockSpec((1, tb), lambda i: (0, i), memory_space=pltpu.VMEM),
        compiler_params=pltpu.CompilerParams(dimension_semantics=("parallel",)),
    )(x_t, w1, b1, w2, b2, w3, b3)

    return out[:, :B].T  # (B, 1)


def init_params(key, in_size=9):
    # Deterministic init mimicking nn.Linear uniform(-1/sqrt(fan_in), 1/sqrt(fan_in)),
    # stored in PyTorch layout (out_features, in_features).
    ks = jax.random.split(key, 6)

    def lin(kw, kb, fan_in, fan_out):
        bound = 1.0 / jnp.sqrt(jnp.float32(fan_in))
        w = jax.random.uniform(kw, (fan_out, fan_in), jnp.float32, -bound, bound)
        b = jax.random.uniform(kb, (fan_out,), jnp.float32, -bound, bound)
        return w, b

    w1, b1 = lin(ks[0], ks[1], in_size, 64)
    w2, b2 = lin(ks[2], ks[3], 64, 64)
    w3, b3 = lin(ks[4], ks[5], 64, 1)
    return {"w1": w1, "b1": b1, "w2": w2, "b2": b2, "w3": w3, "b3": b3}


if __name__ == "__main__":
    key = jax.random.PRNGKey(0)
    k_params, k_x = jax.random.split(key)

    in_size = 9
    batch = 8
    params = init_params(k_params, in_size=in_size)
    x = jax.random.normal(k_x, (batch, in_size), jnp.float32)

    out = evalnet_forward(x, params)
    out = jax.block_until_ready(out)
    assert out.shape == (batch, 1)

    # Reference in plain JAX, mirroring the kernel's dtypes
    # (bf16 MXU operands, f32 accumulation / biases / ReLU / head).
    xb = x.astype(jnp.bfloat16)
    w1b = params["w1"].astype(jnp.bfloat16)
    w2b = params["w2"].astype(jnp.bfloat16)
    h1 = jnp.maximum(
        jnp.dot(xb, w1b.T, preferred_element_type=jnp.float32) + params["b1"], 0.0)
    h2 = jnp.maximum(
        jnp.dot(h1.astype(jnp.bfloat16), w2b.T,
                preferred_element_type=jnp.float32) + params["b2"], 0.0)
    ref = h2 @ params["w3"].T + params["b3"]

    assert jnp.allclose(out, ref, atol=2e-3, rtol=2e-3), float(
        jnp.max(jnp.abs(out - ref)))

    print("KERNEL_OK")
</pallas_src>

<mosaic_0001>
module attributes {stable_mosaic.version = 11 : i64} {
  func.func @evalnet_kernel(%arg0: i32, %arg1: memref<16x128xbf16, #tpu.memory_space<vmem>>, %arg2: memref<64x16xbf16, #tpu.memory_space<vmem>>, %arg3: memref<64x1xf32, #tpu.memory_space<vmem>>, %arg4: memref<64x64xbf16, #tpu.memory_space<vmem>>, %arg5: memref<64x1xf32, #tpu.memory_space<vmem>>, %arg6: memref<64x1xf32, #tpu.memory_space<vmem>>, %arg7: memref<1xf32, #tpu.memory_space<smem>>, %arg8: memref<1x128xf32, #tpu.memory_space<vmem>>) attributes {dimension_semantics = [#tpu.dimension_semantics<parallel>], iteration_bounds = array<i64: 1>, scalar_prefetch = 0 : i64, scratch_operands = 0 : i64, tpu.core_type = #tpu.core_type<tc>, window_params = [{transform_indices = @transform_0, window_bounds = array<i64: 16, 128>}, {pipeline_mode = #tpu.pipeline_mode<synchronous>, transform_indices = @transform_1, window_bounds = array<i64: 64, 16>}, {pipeline_mode = #tpu.pipeline_mode<synchronous>, transform_indices = @transform_2, window_bounds = array<i64: 64, 1>}, {pipeline_mode = #tpu.pipeline_mode<synchronous>, transform_indices = @transform_3, window_bounds = array<i64: 64, 64>}, {pipeline_mode = #tpu.pipeline_mode<synchronous>, transform_indices = @transform_4, window_bounds = array<i64: 64, 1>}, {pipeline_mode = #tpu.pipeline_mode<synchronous>, transform_indices = @transform_5, window_bounds = array<i64: 64, 1>}, {transform_indices = @transform_6, window_bounds = array<i64: 1>}, {transform_indices = @transform_7, window_bounds = array<i64: 1, 128>}]} {
    %c0 = arith.constant 0 : index
    %c0_0 = arith.constant 0 : index
    %0 = vector.load %arg1[%c0, %c0_0] : memref<16x128xbf16, #tpu.memory_space<vmem>>, vector<16x128xbf16>
    %c0_1 = arith.constant 0 : index
    %c0_2 = arith.constant 0 : index
    %1 = vector.load %arg2[%c0_1, %c0_2] : memref<64x16xbf16, #tpu.memory_space<vmem>>, vector<64x16xbf16>
    %cst = arith.constant dense<0.000000e+00> : vector<64x128xf32>
    %2 = tpu.matmul %1, %0, %cst {dimension_numbers = #tpu.dot_dimension_numbers<[1], [0], [0], [1], [0, 0, 1, 1], [], []>} : vector<64x16xbf16>, vector<16x128xbf16>, vector<64x128xf32> -> vector<64x128xf32>
    %c0_3 = arith.constant 0 : index
    %c0_4 = arith.constant 0 : index
    %3 = vector.load %arg3[%c0_3, %c0_4] : memref<64x1xf32, #tpu.memory_space<vmem>>, vector<64x1xf32>
    %4 = vector.broadcast %3 : vector<64x1xf32> to vector<64x128xf32>
    %5 = arith.addf %2, %4 : vector<64x128xf32>
    %cst_5 = arith.constant 0.000000e+00 : f32
    %6 = vector.broadcast %cst_5 : f32 to vector<64x128xf32>
    %7 = arith.maximumf %5, %6 : vector<64x128xf32>
    %c0_6 = arith.constant 0 : index
    %c0_7 = arith.constant 0 : index
    %8 = vector.load %arg4[%c0_6, %c0_7] : memref<64x64xbf16, #tpu.memory_space<vmem>>, vector<64x64xbf16>
    %9 = arith.truncf %7 : vector<64x128xf32> to vector<64x128xbf16>
    %cst_8 = arith.constant dense<0.000000e+00> : vector<64x128xf32>
    %10 = tpu.matmul %8, %9, %cst_8 {dimension_numbers = #tpu.dot_dimension_numbers<[1], [0], [0], [1], [0, 0, 1, 1], [], []>} : vector<64x64xbf16>, vector<64x128xbf16>, vector<64x128xf32> -> vector<64x128xf32>
    %c0_9 = arith.constant 0 : index
    %c0_10 = arith.constant 0 : index
    %11 = vector.load %arg5[%c0_9, %c0_10] : memref<64x1xf32, #tpu.memory_space<vmem>>, vector<64x1xf32>
    %12 = vector.broadcast %11 : vector<64x1xf32> to vector<64x128xf32>
    %13 = arith.addf %10, %12 : vector<64x128xf32>
    %cst_11 = arith.constant 0.000000e+00 : f32
    %14 = vector.broadcast %cst_11 : f32 to vector<64x128xf32>
    %15 = arith.maximumf %13, %14 : vector<64x128xf32>
    %c0_12 = arith.constant 0 : index
    %c0_13 = arith.constant 0 : index
    %16 = vector.load %arg6[%c0_12, %c0_13] : memref<64x1xf32, #tpu.memory_space<vmem>>, vector<64x1xf32>
    %17 = vector.broadcast %16 : vector<64x1xf32> to vector<64x128xf32>
    %18 = arith.mulf %15, %17 : vector<64x128xf32>
    %cst_14 = arith.constant dense<0.000000e+00> : vector<128xf32>
    %19 = vector.multi_reduction <add>, %18, %cst_14 [0] : vector<64x128xf32> to vector<128xf32>
    %20 = vector.shape_cast %19 : vector<128xf32> to vector<1x128xf32>
    %c0_15 = arith.constant 0 : index
    %21 = memref.load %arg7[%c0_15] : memref<1xf32, #tpu.memory_space<smem>>
    %22 = vector.broadcast %21 : f32 to vector<1x128xf32>
    %23 = arith.addf %20, %22 : vector<1x128xf32>
    %c0_16 = arith.constant 0 : index
    %c0_17 = arith.constant 0 : index
    %24 = vector.load %arg8[%c0_16, %c0_17] : memref<1x128xf32, #tpu.memory_space<vmem>>, vector<1x128xf32>
    tpu.vector_store %arg8[%c0_16, %c0_17], %23 {strides = array<i32>} : memref<1x128xf32, #tpu.memory_space<vmem>>, vector<1x128xf32>,
    return
  }
  func.func @transform_0(%arg0: i32) -> (i32, i32) {
    %c0_i32 = arith.constant 0 : i32
    %c0_i32_0 = arith.constant 0 : i32
    return %c0_i32, %arg0 : i32, i32
  }
  func.func @transform_1(%arg0: i32) -> (i32, i32) {
    %c0_i32 = arith.constant 0 : i32
    %c0_i32_0 = arith.constant 0 : i32
    %c0_i32_1 = arith.constant 0 : i32
    return %c0_i32, %c0_i32_0 : i32, i32
  }
  func.func @transform_2(%arg0: i32) -> (i32, i32) {
    %c0_i32 = arith.constant 0 : i32
    %c0_i32_0 = arith.constant 0 : i32
    %c0_i32_1 = arith.constant 0 : i32
    return %c0_i32, %c0_i32_0 : i32, i32
  }
  func.func @transform_3(%arg0: i32) -> (i32, i32) {
    %c0_i32 = arith.constant 0 : i32
    %c0_i32_0 = arith.constant 0 : i32
    %c0_i32_1 = arith.constant 0 : i32
    return %c0_i32, %c0_i32_0 : i32, i32
  }
  func.func @transform_4(%arg0: i32) -> (i32, i32) {
    %c0_i32 = arith.constant 0 : i32
    %c0_i32_0 = arith.constant 0 : i32
    %c0_i32_1 = arith.constant 0 : i32
    return %c0_i32, %c0_i32_0 : i32, i32
  }
  func.func @transform_5(%arg0: i32) -> (i32, i32) {
    %c0_i32 = arith.constant 0 : i32
    %c0_i32_0 = arith.constant 0 : i32
    %c0_i32_1 = arith.constant 0 : i32
    return %c0_i32, %c0_i32_0 : i32, i32
  }
  func.func @transform_6(%arg0: i32) -> i32 {
    %c0_i32 = arith.constant 0 : i32
    %c0_i32_0 = arith.constant 0 : i32
    return %c0_i32 : i32
  }
  func.func @transform_7(%arg0: i32) -> (i32, i32) {
    %c0_i32 = arith.constant 0 : i32
    %c0_i32_0 = arith.constant 0 : i32
    return %c0_i32, %arg0 : i32, i32
  }
}

</mosaic_0001>

<bundles_post_ra>
// kernel: tpu_custom_call.1
= control target key start
LH: loop header
LB: loop body
LE: loop exit
PB: predicated region body
PF: predicated region fallthrough
CT: control target
= control target key end

     0   :  { %vm113_vm0 = vcmask 130048   ;;  %v553_v3 = vmov 0   ;;  %s717_s0 = inlined_call_operand.vmem [shape: bf16[16,128], index: 0, kind: input, shape index: {}]   ;;  %s718_s1 = inlined_call_operand.vmem [shape: bf16[64,16], index: 1, kind: input, shape index: {}]   ;;  %s719_s2 = inlined_call_operand.vmem [shape: f32[64,1], index: 2, kind: input, shape index: {}]   ;;  %s720_s3 = inlined_call_operand.vmem [shape: bf16[64,64], index: 3, kind: input, shape index: {}]   ;;  %s721_s4 = inlined_call_operand.vmem [shape: f32[64,1], index: 4, kind: input, shape index: {}]   ;;  %s722_s5 = inlined_call_operand.vmem [shape: f32[64,1], index: 5, kind: input, shape index: {}]   ;;  %s723_s6 = inlined_call_operand.<no memory space> [shape: f32[1], index: 6, kind: input, shape index: {}]   ;;  %s724_s7 = inlined_call_operand.hbm [shape: f32[1,128], index: 7, kind: output, shape index: {}]  }
   0x1   :  { %v520_v0 = vld [vmem:[%s717_s0] sm:$0xff]   ;;  %v522_v2 = vld [vmem:[%s718_s1 + $0x8] sm:$0xff]   ;;  %518 = vset.pattern.permute.xlu0 %v553_v3  ;;  %v523_v4 = vld [vmem:[%s718_s1 + $0x10] sm:$0xff]   ;;  %519 = vset.pattern.permute.xlu1 %v553_v3 }
   0x2   :  { %v521_v1 = vld [vmem:[%s718_s1] sm:$0xff]   ;;  %482 = vmatprep.subr.bf16.mxu0 %v520_v0  ;;  %v41_v6 = vld [vmem:[%s719_s2 + $0x10] sm:$0xff]  ;;  %v40_v7 = vld [vmem:[%s719_s2 + $0x8] sm:$0xff] }
   0x3   :  { %483 = vmatpush3.bf16.msra.mxu0 %v520_v0  ;;  %484 = vmatprep.mubr.msk.bf16.mxu0 %vm113_vm0, %v521_v1  ;;  %v39_v5 = vld [vmem:[%s719_s2] sm:$0xff]  ;;  %v42_v8 = vld [vmem:[%s719_s2 + $0x18] sm:$0xff]  ;;  %v44_v11 = vld [vmem:[%s719_s2 + $0x28] sm:$0xff] }
   0x4   :  { %49 = vperm.xlu0 %518, %v39_v5   ;;  %59 = vperm.xlu1 %519, %v41_v6   ;;  %v524_v9 = vld [vmem:[%s718_s1 + $0x18] sm:$0xff]   ;;  %v43_v10 = vld [vmem:[%s719_s2 + $0x20] sm:$0xff]  ;;  %v45_v12 = vld [vmem:[%s719_s2 + $0x30] sm:$0xff] }
   0x6   :  { %485 = vmatmul.mubr.msk.bf16.vlgmr.msra.gmra.mrb[0].mxu0 %vm113_vm0, %v522_v2 }
   0x7   :  { %488 = vmatprep.mubr.msk.bf16.mxu0 %vm113_vm0, %v523_v4 }
   0x8   :  { %54 = vperm.xlu0 %518, %v40_v7   ;;  %64 = vperm.xlu1 %519, %v42_v8  }
   0xc   :  { %69 = vperm.xlu0 %518, %v43_v10   ;;  %74 = vperm.xlu1 %519, %v44_v11  }
   0xe   :  { %489 = vmatmul.mubr.msk.bf16.gmra.mrb[4].mxu0 %vm113_vm0, %v524_v9 }
   0xf   :  { %13 = vsyncpa [#allocation4], 0  ;;  %v46_v13 = vld [vmem:[%s719_s2 + $0x38] sm:$0xff]  ;;  %v211_v14 = vld [vmem:[%s721_s4] sm:$0xff]  ;;  %vm279_vm1 = vcmask 523264   ;;  %s554_s13 = smov [#allocation3]  }
  0x10   :  { %79 = vperm.xlu0 %518, %v45_v12   ;;  %84 = vperm.xlu1 %519, %v46_v13   ;;  %v212_v15 = vld [vmem:[%s721_s4 + $0x8] sm:$0xff]  ;;  %v213_v16 = vld [vmem:[%s721_s4 + $0x10] sm:$0xff]  ;;  %v214_v17 = vld [vmem:[%s721_s4 + $0x18] sm:$0xff]  ;;  %s444_s14 = sshll.u32 %s554_s13, 4  ;;  %s445_s14 = int_to_ptr.vmem [resolvable:$true] %s444_s14 }
  0x11   :  { %v365_v18 = vld [vmem:[%s722_s5] sm:$0xff]  ;;  %v366_v19 = vld [vmem:[%s722_s5 + $0x8] sm:$0xff]  ;;  %v367_v21 = vld [vmem:[%s722_s5 + $0x10] sm:$0xff]  ;;  %s529_s15 = scalar_lea.vmem %s445_s14, 16  ;;  %s533_s16 = scalar_lea.vmem %s445_s14, 32 }
  0x12   :  { %v215_v20 = vld [vmem:[%s721_s4 + $0x20] sm:$0xff]  ;;  %v216_v22 = vld [vmem:[%s721_s4 + $0x28] sm:$0xff]  ;;  %v368_v23 = vld [vmem:[%s722_s5 + $0x18] sm:$0xff]  ;;  %p530_p0 = scmp.ne.s32.totalorder %s445_s14, %s529_s15  ;;  %p534_p1 = scmp.lt.s32.totalorder %s445_s14, %s445_s14 }
  0x13   :  { %v217_v24 = vld [vmem:[%s721_s4 + $0x30] sm:$0xff]  ;;  %v369_v25 = vld [vmem:[%s722_s5 + $0x20] sm:$0xff]  ;;  %v218_v26 = vld [vmem:[%s721_s4 + $0x38] sm:$0xff]  ;;  %p535_p2 = scmp.lt.s32.totalorder %s533_s16, %s529_s15 }
  0x14   :  { %221 = vperm.xlu0 %518, %v211_v14   ;;  %226 = vperm.xlu1 %519, %v212_v15   ;;  %v370_v27 = vld [vmem:[%s722_s5 + $0x28] sm:$0xff]  ;;  %v371_v28 = vld [vmem:[%s722_s5 + $0x30] sm:$0xff]  ;;  %v372_v29 = vld [vmem:[%s722_s5 + $0x38] sm:$0xff] }
  0x15   :  { %v525_v30 = vld [vmem:[%s720_s3] sm:$0xff]   ;;  %v526_v31 = vld [vmem:[%s720_s3 + $0x10] sm:$0xff]   ;;  %v527_v4 = vld [vmem:[%s720_s3 + $0x8] sm:$0xff]   ;;  %p536_p3 = por %p535_p2, %p534_p1 }
  0x16   :  { %500 = vmatprep.mubr.msk.bf16.mxu0 %vm279_vm1, %v525_v30  ;;  %504 = vmatprep.mubr.msk.bf16.mxu1 %vm279_vm1, %v526_v31  ;;  %v528_v5 = vld [vmem:[%s720_s3 + $0x18] sm:$0xff]  }
  0x17   :  { %p537_p4 = pnand %p536_p3, %p530_p0 }
  0x18   :  { %231 = vperm.xlu0 %518, %v213_v16   ;;  %236 = vperm.xlu1 %519, %v214_v17  }
  0x1c   :  { %375 = vperm.xlu0 %518, %v365_v18   ;;  %380 = vperm.xlu1 %519, %v366_v19  }
  0x20   :  { %241 = vperm.xlu0 %518, %v215_v20   ;;  %385 = vperm.xlu1 %519, %v367_v21  }
  0x24   :  { %246 = vperm.xlu0 %518, %v216_v22   ;;  %390 = vperm.xlu1 %519, %v368_v23  }
  0x28   :  { %251 = vperm.xlu0 %518, %v217_v24   ;;  %395 = vperm.xlu1 %519, %v369_v25  }
  0x2c   :  { %256 = vperm.xlu0 %518, %v218_v26   ;;  %400 = vperm.xlu1 %519, %v370_v27  }
  0x30   :  { %405 = vperm.xlu0 %518, %v371_v28   ;;  %410 = vperm.xlu1 %519, %v372_v29  }
  0x83   :  { %v50_v32 = vpop.permute.xlu0 %49  ;;  %v60_v33 = vpop.permute.xlu1 %59 }
  0x87   :  { %v55_v34 = vpop.permute.xlu0 %54  ;;  %v65_v35 = vpop.permute.xlu1 %64 }
  0x8b   :  { %v70_v39 = vpop.permute.xlu0 %69  ;;  %v75_v44 = vpop.permute.xlu1 %74 }
  0x8f   :  { %v80_v51 = vpop.permute.xlu0 %79  ;;  %v85_v56 = vpop.permute.xlu1 %84 }
  0x93   :  { %v222_v6 = vpop.permute.xlu0 %221  ;;  %v227_v7 = vpop.permute.xlu1 %226 }
  0x97   :  { %v232_v8 = vpop.permute.xlu0 %231  ;;  %v237_v9 = vpop.permute.xlu1 %236 }
  0x9b   :  { %v376_v10 = vpop.permute.xlu0 %375  ;;  %v381_v11 = vpop.permute.xlu1 %380 }
  0x9f   :  { %v242_v12 = vpop.permute.xlu0 %241  ;;  %v386_v13 = vpop.permute.xlu1 %385 }
  0xa3   :  { %v247_v14 = vpop.permute.xlu0 %246  ;;  %v391_v15 = vpop.permute.xlu1 %390 }
  0xa7   :  { %v252_v29 = vpop.permute.xlu0 %251 }
  0xd9   :  { %v486_v36 = vpop.f32.mrb[0].mxu0 }
  0xda   :  { %v169_v37 = vadd.f32 %v486_v36, %v60_v33  ;;  %v160_v38 = vpop.f32.mrb[1].mxu0  ;;  %v396_v33 = vpop.permute.xlu1 %395 }
  0xdb   :  { %v161_v40 = vadd.f32 %v160_v38, %v50_v32  ;;  %v487_v41 = vpop.f32.mrb[2].mxu0 }
  0xdc   :  { %v172_v42 = vadd.f32 %v487_v41, %v65_v35  ;;  %v163_v43 = vpop.f32.mrb[3].mxu0  ;;  %v193_v46 = vmax.f32 %v169_v37, 0.0 }
  0xdd   :  { %v164_v45 = vadd.f32 %v163_v43, %v55_v34  ;;  %v191_v48 = vmax.f32 %v161_v40, 0.0 }
  0xde   :  { %v194_v47 = vmax.f32 %v172_v42, 0.0  ;;  %v257_v42 = vpop.permute.xlu0 %256 }
  0xdf   :  { %v192_v49 = vmax.f32 %v164_v45, 0.0 }
  0xe0   :  { %v208_v50 = vpack.c.bf16 %v194_v47, %v193_v46  ;;  %v401_v47 = vpop.permute.xlu1 %400 }
  0xe1   :  { %v207_v52 = vpack.c.bf16 %v192_v49, %v191_v48  ;;  %v490_v53 = vpop.f32.mrb[4].mxu0 }
  0xe2   :  { %v185_v54 = vadd.f32 %v490_v53, %v80_v51  ;;  %v176_v55 = vpop.f32.mrb[5].mxu0 }
  0xe3   :  { %v177_v57 = vadd.f32 %v176_v55, %v70_v39  ;;  %v491_v58 = vpop.f32.mrb[6].mxu0  ;;  %492 = vmatprep.subr.bf16.mxu0 %v207_v52  ;;  %508 = vmatprep.subr.bf16.mxu1 %v207_v52 }
  0xe4   :  { %v188_v59 = vadd.f32 %v491_v58, %v85_v56  ;;  %v179_v60 = vpop.f32.mrb[7].mxu0  ;;  %493 = vmatpush3.bf16.msra.mxu0 %v207_v52  ;;  %512 = vmatpush3.bf16.msra.mxu1 %v207_v52  ;;  %v197_v62 = vmax.f32 %v185_v54, 0.0  ;;  %v406_v54 = vpop.permute.xlu0 %405 }
  0xe5   :  { %v180_v61 = vadd.f32 %v179_v60, %v75_v44  ;;  %494 = vmatprep.subr.bf16.mxu0 %v208_v50  ;;  %509 = vmatprep.subr.bf16.mxu1 %v208_v50  ;;  %v195_v0 = vmax.f32 %v177_v57, 0.0  ;;  %v411_v57 = vpop.permute.xlu1 %410 }
  0xe6   :  { %v198_v63 = vmax.f32 %v188_v59, 0.0 }
  0xe7   :  { %v196_v1 = vmax.f32 %v180_v61, 0.0 }
  0xe8   :  { %v210_v2 = vpack.c.bf16 %v198_v63, %v197_v62  ;;  %495 = vmatpush3.bf16.msra.mxu0 %v208_v50  ;;  %513 = vmatpush3.bf16.msra.mxu1 %v208_v50 }
  0xe9   :  { %v209_v3 = vpack.c.bf16 %v196_v1, %v195_v0 }
  0xeb   :  { %496 = vmatprep.subr.bf16.mxu0 %v209_v3  ;;  %510 = vmatprep.subr.bf16.mxu1 %v209_v3 }
  0xec   :  { %497 = vmatpush3.bf16.msra.mxu0 %v209_v3  ;;  %514 = vmatpush3.bf16.msra.mxu1 %v209_v3 }
  0xed   :  { %498 = vmatprep.subr.bf16.mxu0 %v210_v2  ;;  %511 = vmatprep.subr.bf16.mxu1 %v210_v2 }
  0xf0   :  { %499 = vmatpush3.bf16.msra.mxu0 %v210_v2  ;;  %515 = vmatpush3.bf16.msra.mxu1 %v210_v2  ;;  %v435_v2 = vstv %s723_s6 }
  0xf3   :  { %501 = vmatmul.mubr.msk.bf16.vlgmr.msra.gmra.mrb[8].mxu0 %vm279_vm1, %v527_v4  ;;  %505 = vmatmul.mubr.msk.bf16.vlgmr.msra.gmra.mrb[0].mxu1 %vm279_vm1, %v528_v5 }
 0x1c6   :  { %v502_v16 = vpop.f32.mrb[8].mxu0  ;;  %v506_v17 = vpop.f32.mrb[0].mxu1 }
 0x1c7   :  { %v326_v18 = vpop.f32.mrb[9].mxu0  ;;  %v342_v19 = vpop.f32.mrb[1].mxu1  ;;  %v335_v20 = vadd.f32 %v502_v16, %v232_v8  ;;  %v351_v39 = vadd.f32 %v506_v17, %v252_v29 }
 0x1c8   :  { %v327_v21 = vadd.f32 %v326_v18, %v222_v6  ;;  %v503_v22 = vpop.f32.mrb[10].mxu0  ;;  %v507_v23 = vpop.f32.mrb[2].mxu1  ;;  %v343_v31 = vadd.f32 %v342_v19, %v242_v12 }
 0x1c9   :  { %v329_v24 = vpop.f32.mrb[11].mxu0  ;;  %v345_v25 = vpop.f32.mrb[3].mxu1  ;;  %v338_v27 = vadd.f32 %v503_v22, %v237_v9  ;;  %v359_v30 = vmax.f32 %v335_v20, 0.0  ;;  %v354_v44 = vadd.f32 %v507_v23, %v257_v42  ;;  %v363_v48 = vmax.f32 %v351_v39, 0.0 }
 0x1ca   :  { %v357_v26 = vmax.f32 %v327_v21, 0.0  ;;  %v330_v28 = vadd.f32 %v329_v24, %v227_v7  ;;  %v346_v37 = vadd.f32 %v345_v25, %v247_v14  ;;  %v361_v40 = vmax.f32 %v343_v31, 0.0 }
 0x1cb   :  { %v360_v35 = vmax.f32 %v338_v27, 0.0  ;;  %v415_v38 = vmul.f32 %v386_v13, %v359_v30  ;;  %v364_v51 = vmax.f32 %v354_v44, 0.0  ;;  %v419_v55 = vmul.f32 %v406_v54, %v363_v48 }
 0x1cc   :  { %v358_v32 = vmax.f32 %v330_v28, 0.0  ;;  %v413_v34 = vmul.f32 %v376_v10, %v357_v26  ;;  %v362_v46 = vmax.f32 %v346_v37, 0.0  ;;  %v417_v49 = vmul.f32 %v396_v33, %v361_v40 }
 0x1cd   :  { %v416_v43 = vmul.f32 %v391_v15, %v360_v35  ;;  %v420_v58 = vmul.f32 %v411_v57, %v364_v51 }
 0x1ce   :  { %v414_v36 = vmul.f32 %v381_v11, %v358_v32  ;;  %v418_v52 = vmul.f32 %v401_v47, %v362_v46 }
 0x1d0   :  { %v421_v41 = vadd.f32 %v414_v36, %v413_v34 }
 0x1d2   :  { %v422_v45 = vadd.f32 %v421_v41, %v415_v38 }
 0x1d4   :  { %v423_v50 = vadd.f32 %v422_v45, %v416_v43 }
 0x1d6   :  { %v424_v53 = vadd.f32 %v423_v50, %v417_v49 }
 0x1d8   :  { %v425_v56 = vadd.f32 %v424_v53, %v418_v52 }
 0x1da   :  { %v426_v59 = vadd.f32 %v425_v56, %v419_v55 }
 0x1dc   :  { %v427_v60 = vadd.f32 %v426_v59, %v420_v58 }
 0x1de   :  { %v428_v61 = vrot.slane %v427_v60, 4 }
 0x1e0   :  { %v429_v62 = vadd.f32 %v428_v61, %v427_v60 }
 0x1e2   :  { %v430_v63 = vrot.slane %v429_v62, 2 }
 0x1e4   :  { %v431_v0 = vadd.f32 %v430_v63, %v429_v62 }
 0x1e6   :  { %v432_v1 = vrot.slane %v431_v0, 1 }
 0x1e8   :  { %v433_v3 = vadd.f32 %v432_v1, %v431_v0 }
 0x1ea   :  { %v436_v4 = vadd.f32 %v435_v2, %v433_v3 }
 0x1ec   :  { %437 = vst [vmem:[#allocation3] sm:$0x1] %v436_v4 }
 0x1ed   :  { %540 = shalt.err (!%p537_p4)
}
 0x1ee   :  { %s541_s19 = scalar_lea.hbm %s724_s7, 16 }
 0x1ef   :  { %p542_p5 = scmp.ne.s32.totalorder %s724_s7, %s541_s19  ;;  %p545_p6 = scmp.lt.u32.totalorder %s541_s19, %s724_s7 }
 0x1f1   :  { %p547_p7 = pnand %p545_p6, %p542_p5 }
 0x1f3   :  { %550 = shalt.err (!%p547_p7)
}
 0x1f4   :  { %447 = dma.vmem_to_hbm [thread:$0]  %s445_s14, 16, %s724_s7, [#allocation4]  }
 0x1f5   :  { %551 = dma.done.wait [#allocation4], 16  }
 0x1f6   :  { %552 = vsyncadd [#allocation4], 4294967280 }
 0x1f7   :  { %451 = vsyncpa [#allocation4], 1 }

</bundles_post_ra>
